<compile_context>
chip_gen: v7x
topology: tpu7x:2x2x1
jax: 0.10.0
libtpu: 0.0.40
codegen_flags: <defaults>
</compile_context>

<pallas_src>
import functools

import jax
import jax.numpy as jnp
from jax import lax
from jax.experimental import pallas as pl
from jax.experimental.pallas import tpu as pltpu


_LN_PARAM_ROWS = 3  # packed param operand rows: [bias; gamma; beta]


def _self_output_kernel(x_ref, w_ref, p_ref, *refs, eps, has_att, mxu_dtype):
    """One (tm, H) row tile of: LayerNorm(x @ W + b [+ att] + residual)."""
    if has_att:
        att_ref, inp_ref, o_ref = refs
    else:
        inp_ref, o_ref = refs

    x = x_ref[...]
    w = w_ref[...]
    if mxu_dtype is not None:
        # In-kernel cast (zero extra HBM traffic) so the MXU runs native bf16
        # passes instead of emulated f32 matmul (critical on v5e).
        x = x.astype(mxu_dtype)
        w = w.astype(mxu_dtype)
    h = jnp.dot(x, w, preferred_element_type=jnp.float32)   # f32 accumulation

    p = p_ref[...]                                  # (3, H) f32: bias / gamma / beta
    h = h + p[0:1, :]                               # bias, broadcast over rows
    if has_att:
        h = h + att_ref[...].astype(jnp.float32)
    # Dropout is identity at inference time.
    y = h + inp_ref[...].astype(jnp.float32)        # residual add

    # One-pass LayerNorm statistics over the hidden (lane) axis, in f32.
    inv_h = jnp.float32(1.0 / y.shape[-1])
    s1 = jnp.sum(y, axis=-1, keepdims=True)
    s2 = jnp.sum(y * y, axis=-1, keepdims=True)
    mean = s1 * inv_h
    var = jnp.maximum(s2 * inv_h - mean * mean, 0.0)
    scale = lax.rsqrt(var + eps)                    # (tm, 1)
    # Fold gamma into the scale, add beta.
    o_ref[...] = ((y - mean) * (scale * p[1:2, :]) + p[2:3, :]).astype(o_ref.dtype)


def _round_down(n, m):
    return max(m, (n // m) * m)


def _round_up(n, m):
    return ((n + m - 1) // m) * m


def _sublane(dtype):
    # Native sublane multiple: 8 rows for 32-bit, 16 for 16-bit, 32 for 8-bit.
    return max(8, 32 // max(1, jnp.dtype(dtype).itemsize))


def _vmem_capacity_bytes():
    try:
        return int(pltpu.get_tpu_info().vmem_capacity_bytes)
    except Exception:
        return 64 << 20   # conservative default (v7x per-TensorCore VMEM)


def _vmem_bytes(tm, H, per_row_stream_bytes, weight_bytes):
    """Pipeline VMEM footprint estimate for tile height tm."""
    row_tiles = 2 * tm * per_row_stream_bytes             # double-buffered row streams (incl. output)
    weight = weight_bytes                                  # single-buffered resident weight (Buffered(1))
    ln_params = _LN_PARAM_ROWS * max(H, 128) * 4
    temps = 3 * tm * max(H, 128) * 4                       # in-kernel f32 temporaries (h/y, squares, out)
    return row_tiles + weight + ln_params + temps


def bert_self_output(hidden_states, input_tensor, params,
                     layerwise_hidden_att=None, *, eps=1e-12,
                     tm=512, mxu_dtype=None):
    """hidden_states, input_tensor: [B, S, H]; params: dict with W (H,H), b/gamma/beta (H,).

    mxu_dtype: optional dtype (e.g. jnp.bfloat16) that x and W are cast to *inside*
    the kernel right before the matmul (f32 accumulation, f32 LayerNorm).  HBM
    streaming always uses the operands' native dtypes (no wrapper-side casts).
    """
    B, S, H = hidden_states.shape
    assert input_tensor.shape == (B, S, H)

    has_att = layerwise_hidden_att is not None
    if has_att:
        # Reproduce the seq-length slicing branch from the PyTorch forward.
        att = (layerwise_hidden_att[:, :S]
               if layerwise_hidden_att.shape[1] != S else layerwise_hidden_att)
        assert att.shape == (B, S, H)

    rows = B * S
    out_dtype = hidden_states.dtype

    # Row-major merge of (B, S) -> rows is layout-free (no HBM copy).
    x2 = hidden_states.reshape(rows, H)
    inp2 = input_tensor.reshape(rows, H)
    att2 = att.reshape(rows, H) if has_att else None
    W = params["W"]                                        # (H, H), applied as x @ W
    ln_params = jnp.stack(
        [params["b"], params["gamma"], params["beta"]]).astype(jnp.float32)   # (3, H), tiny

    row_dtypes = [x2.dtype, inp2.dtype, jnp.dtype(out_dtype)]
    if has_att:
        row_dtypes.append(att2.dtype)
    per_row_stream_bytes = H * sum(jnp.dtype(dt).itemsize for dt in row_dtypes)
    weight_bytes = H * H * jnp.dtype(W.dtype).itemsize
    sub = max(_sublane(dt) for dt in row_dtypes)

    # ---- tile selection (mem-bound kernel: go big, stay inside VMEM) ----
    vmem_cap = _vmem_capacity_bytes()
    budget = int(vmem_cap * 0.7)

    if rows <= sub:
        tm_eff = rows                                      # single tile == full extent
    else:
        tm_eff = _round_down(min(tm, rows), sub)
    while tm_eff > sub and _vmem_bytes(tm_eff, H, per_row_stream_bytes,
                                       weight_bytes) > budget:
        tm_eff = _round_down(tm_eff // 2, sub)

    # v7x megacore: prefer an even tile count so both TensorCores get equal work.
    n_tiles = pl.cdiv(rows, tm_eff)
    if n_tiles % 2 == 1 and rows > sub:
        tm_cand = _round_up(pl.cdiv(rows, n_tiles + 1), sub)
        if (tm_cand >= sub and pl.cdiv(rows, tm_cand) % 2 == 0 and
                _vmem_bytes(tm_cand, H, per_row_stream_bytes, weight_bytes) <= budget):
            tm_eff = tm_cand
    grid = (pl.cdiv(rows, tm_eff),)

    vmem_est = _vmem_bytes(tm_eff, H, per_row_stream_bytes, weight_bytes)
    vmem_limit = int(vmem_est * 1.4) + (2 << 20)
    vmem_limit = max(vmem_limit, 16 << 20)
    vmem_limit = min(vmem_limit, vmem_cap - (1 << 20))     # never above physical VMEM

    # Advisory cost so XLA schedules/overlaps this custom call correctly.
    bytes_accessed = (sum(int(a.size) * jnp.dtype(a.dtype).itemsize
                          for a in ([x2, inp2, W, ln_params] + ([att2] if has_att else [])))
                      + rows * H * jnp.dtype(out_dtype).itemsize)
    cost = pl.CostEstimate(flops=2 * rows * H * H + 10 * rows * H,
                           transcendentals=rows,
                           bytes_accessed=int(bytes_accessed))

    kernel = functools.partial(_self_output_kernel, eps=float(eps),
                               has_att=has_att, mxu_dtype=mxu_dtype)

    row_spec = pl.BlockSpec((tm_eff, H), lambda i: (i, 0))
    inputs = [x2, W, ln_params] + ([att2] if has_att else []) + [inp2]

    def _run(single_buffer_consts):
        if single_buffer_consts:
            w_spec = pl.BlockSpec((H, H), lambda i: (0, 0),
                                  pipeline_mode=pl.Buffered(1))
            p_spec = pl.BlockSpec((_LN_PARAM_ROWS, H), lambda i: (0, 0),
                                  pipeline_mode=pl.Buffered(1))
        else:
            w_spec = pl.BlockSpec((H, H), lambda i: (0, 0))
            p_spec = pl.BlockSpec((_LN_PARAM_ROWS, H), lambda i: (0, 0))
        in_specs = [row_spec, w_spec, p_spec] + ([row_spec] if has_att else []) + [row_spec]
        return pl.pallas_call(
            kernel,
            out_shape=jax.ShapeDtypeStruct((rows, H), out_dtype),
            grid_spec=pltpu.PrefetchScalarGridSpec(
                num_scalar_prefetch=0,
                grid=grid,
                in_specs=in_specs,
                out_specs=row_spec,
            ),
            compiler_params=pltpu.CompilerParams(
                dimension_semantics=("parallel",),
                vmem_limit_bytes=int(vmem_limit)),
            cost_estimate=cost,
        )(*inputs)

    try:
        out2 = _run(single_buffer_consts=True)
    except Exception:
        # Older jax without pipeline_mode / single-buffer support: the constant
        # operands just get double-buffered (extra VMEM only, same numerics).
        out2 = _run(single_buffer_consts=False)

    return out2.reshape(B, S, H)


def _reference(hidden_states, input_tensor, params, layerwise_hidden_att=None, eps=1e-12):
    h = jnp.einsum("bsh,hk->bsk", hidden_states.astype(jnp.float32),
                   params["W"].astype(jnp.float32)) + params["b"]
    if layerwise_hidden_att is not None:
        S = hidden_states.shape[1]
        a = (layerwise_hidden_att[:, :S]
             if layerwise_hidden_att.shape[1] != S else layerwise_hidden_att)
        h = h + a.astype(jnp.float32)
    y = h + input_tensor.astype(jnp.float32)
    mean = jnp.mean(y, axis=-1, keepdims=True)
    var = jnp.mean((y - mean) ** 2, axis=-1, keepdims=True)
    normed = (y - mean) / jnp.sqrt(var + eps)
    return normed * params["gamma"] + params["beta"]


if __name__ == "__main__":
    B, S, H = 2, 8, 32
    key = jax.random.PRNGKey(0)
    k1, k2, k3, k4, k5, k6 = jax.random.split(key, 6)

    hidden_states = jax.random.normal(k1, (B, S, H), jnp.float32)
    input_tensor = jax.random.normal(k2, (B, S, H), jnp.float32)
    # Longer att sequence exercises the torch slicing branch (att[:, :S]).
    layerwise_hidden_att = jax.random.normal(k3, (B, S + 4, H), jnp.float32) * 0.1

    params = {
        "W": jax.random.normal(k4, (H, H), jnp.float32) * (1.0 / H ** 0.5),
        "b": jax.random.normal(k5, (H,), jnp.float32) * 0.01,
        "gamma": 1.0 + 0.05 * jax.random.normal(k6, (H,), jnp.float32),
        "beta": jnp.zeros((H,), jnp.float32),
    }

    # f32 path, with layerwise_hidden_att (sliced).
    out = jax.block_until_ready(
        bert_self_output(hidden_states, input_tensor, params,
                         layerwise_hidden_att=layerwise_hidden_att))
    ref = _reference(hidden_states, input_tensor, params,
                     layerwise_hidden_att=layerwise_hidden_att)
    assert out.shape == (B, S, H)
    assert jnp.max(jnp.abs(out - ref)) < 3e-4, "mismatch vs reference (f32, att)"

    # f32 path, specialized att=None variant (no att stream at all).
    out2 = jax.block_until_ready(bert_self_output(hidden_states, input_tensor, params))
    ref2 = _reference(hidden_states, input_tensor, params)
    assert jnp.max(jnp.abs(out2 - ref2)) < 3e-4, "mismatch vs reference (f32, no att)"

    # Ragged row count: exercises the native non-divisible grid (masked tail tile,
    # no wrapper-side padding copies).
    S3 = 9
    hs3 = jax.random.normal(k1, (B, S3, H), jnp.float32)
    it3 = jax.random.normal(k2, (B, S3, H), jnp.float32)
    out3 = jax.block_until_ready(bert_self_output(hs3, it3, params))
    ref3 = _reference(hs3, it3, params)
    assert jnp.max(jnp.abs(out3 - ref3)) < 3e-4, "mismatch vs reference (ragged rows)"

    # In-kernel bf16 MXU cast (the v5e recipe): f32 streams, bf16 matmul, f32 accum/LN.
    out_mxu = jax.block_until_ready(
        bert_self_output(hidden_states, input_tensor, params,
                         layerwise_hidden_att=layerwise_hidden_att,
                         mxu_dtype=jnp.bfloat16))
    assert out_mxu.dtype == jnp.float32
    assert jnp.max(jnp.abs(out_mxu - ref)) < 5e-2, "mismatch vs reference (bf16 MXU)"

    # bf16-streamed activations (native dtype streaming; exercises the 16-row sublane path).
    hs_bf = hidden_states.astype(jnp.bfloat16)
    it_bf = input_tensor.astype(jnp.bfloat16)
    out_bf = jax.block_until_ready(bert_self_output(hs_bf, it_bf, params))
    ref_bf = _reference(hs_bf.astype(jnp.float32), it_bf.astype(jnp.float32), params)
    assert out_bf.dtype == jnp.bfloat16
    assert jnp.max(jnp.abs(out_bf.astype(jnp.float32) - ref_bf)) < 5e-2, \
        "mismatch vs reference (bf16 streams)"

    print("KERNEL_OK")
</pallas_src>

<mosaic_0001>
module attributes {stable_mosaic.version = 11 : i64} {
  func.func @_self_output_kernel(%arg0: i32, %arg1: memref<8x32xf32, #tpu.memory_space<vmem>>, %arg2: memref<32x32xf32, #tpu.memory_space<vmem>>, %arg3: memref<3x32xf32, #tpu.memory_space<vmem>>, %arg4: memref<8x32xf32, #tpu.memory_space<vmem>>, %arg5: memref<8x32xf32, #tpu.memory_space<vmem>>, %arg6: memref<8x32xf32, #tpu.memory_space<vmem>>) attributes {dimension_semantics = [#tpu.dimension_semantics<parallel>], iteration_bounds = array<i64: 2>, scalar_prefetch = 0 : i64, scratch_operands = 0 : i64, tpu.core_type = #tpu.core_type<tc>, window_params = [{transform_indices = @transform_0, window_bounds = array<i64: 8, 32>}, {pipeline_mode = #tpu.pipeline_mode<synchronous>, transform_indices = @transform_1, window_bounds = array<i64: 32, 32>}, {pipeline_mode = #tpu.pipeline_mode<synchronous>, transform_indices = @transform_2, window_bounds = array<i64: 3, 32>}, {transform_indices = @transform_3, window_bounds = array<i64: 8, 32>}, {transform_indices = @transform_4, window_bounds = array<i64: 8, 32>}, {transform_indices = @transform_5, window_bounds = array<i64: 8, 32>}]} {
    %c0 = arith.constant 0 : index
    %c0_0 = arith.constant 0 : index
    %0 = vector.load %arg1[%c0, %c0_0] : memref<8x32xf32, #tpu.memory_space<vmem>>, vector<8x32xf32>
    %c0_1 = arith.constant 0 : index
    %c0_2 = arith.constant 0 : index
    %1 = vector.load %arg2[%c0_1, %c0_2] : memref<32x32xf32, #tpu.memory_space<vmem>>, vector<32x32xf32>
    %cst = arith.constant dense<0.000000e+00> : vector<8x32xf32>
    %2 = tpu.matmul %0, %1, %cst {dimension_numbers = #tpu.dot_dimension_numbers<[1], [0], [0], [1], [0, 0, 1, 1], [], []>} : vector<8x32xf32>, vector<32x32xf32>, vector<8x32xf32> -> vector<8x32xf32>
    %c0_3 = arith.constant 0 : index
    %c0_4 = arith.constant 0 : index
    %3 = vector.load %arg3[%c0_3, %c0_4] : memref<3x32xf32, #tpu.memory_space<vmem>>, vector<3x32xf32>
    %4 = vector.extract_strided_slice %3 {offsets = [0, 0], sizes = [1, 32], strides = [1, 1]} : vector<3x32xf32> to vector<1x32xf32>
    %5 = vector.broadcast %4 : vector<1x32xf32> to vector<8x32xf32>
    %6 = arith.addf %2, %5 : vector<8x32xf32>
    %c0_5 = arith.constant 0 : index
    %c0_6 = arith.constant 0 : index
    %7 = vector.load %arg4[%c0_5, %c0_6] : memref<8x32xf32, #tpu.memory_space<vmem>>, vector<8x32xf32>
    %8 = arith.addf %6, %7 : vector<8x32xf32>
    %c0_7 = arith.constant 0 : index
    %c0_8 = arith.constant 0 : index
    %9 = vector.load %arg5[%c0_7, %c0_8] : memref<8x32xf32, #tpu.memory_space<vmem>>, vector<8x32xf32>
    %10 = arith.addf %8, %9 : vector<8x32xf32>
    %cst_9 = arith.constant dense<0.000000e+00> : vector<8xf32>
    %11 = vector.multi_reduction <add>, %10, %cst_9 [1] : vector<8x32xf32> to vector<8xf32>
    %12 = vector.shape_cast %11 : vector<8xf32> to vector<8x1xf32>
    %13 = arith.mulf %10, %10 : vector<8x32xf32>
    %cst_10 = arith.constant dense<0.000000e+00> : vector<8xf32>
    %14 = vector.multi_reduction <add>, %13, %cst_10 [1] : vector<8x32xf32> to vector<8xf32>
    %15 = vector.shape_cast %14 : vector<8xf32> to vector<8x1xf32>
    %cst_11 = arith.constant 3.125000e-02 : f32
    %16 = vector.broadcast %cst_11 : f32 to vector<8x1xf32>
    %17 = arith.mulf %12, %16 : vector<8x1xf32>
    %cst_12 = arith.constant 3.125000e-02 : f32
    %18 = vector.broadcast %cst_12 : f32 to vector<8x1xf32>
    %19 = arith.mulf %15, %18 : vector<8x1xf32>
    %20 = arith.mulf %17, %17 : vector<8x1xf32>
    %21 = arith.subf %19, %20 : vector<8x1xf32>
    %cst_13 = arith.constant 0.000000e+00 : f32
    %22 = vector.broadcast %cst_13 : f32 to vector<8x1xf32>
    %23 = arith.maximumf %21, %22 : vector<8x1xf32>
    %cst_14 = arith.constant 9.99999996E-13 : f32
    %24 = vector.broadcast %cst_14 : f32 to vector<8x1xf32>
    %25 = arith.addf %23, %24 : vector<8x1xf32>
    %26 = math.rsqrt %25 : vector<8x1xf32>
    %27 = vector.broadcast %17 : vector<8x1xf32> to vector<8x32xf32>
    %28 = arith.subf %10, %27 : vector<8x32xf32>
    %29 = vector.extract_strided_slice %3 {offsets = [1, 0], sizes = [1, 32], strides = [1, 1]} : vector<3x32xf32> to vector<1x32xf32>
    %30 = vector.broadcast %26 : vector<8x1xf32> to vector<8x32xf32>
    %31 = vector.broadcast %29 : vector<1x32xf32> to vector<8x32xf32>
    %32 = arith.mulf %30, %31 : vector<8x32xf32>
    %33 = arith.mulf %28, %32 : vector<8x32xf32>
    %34 = vector.extract_strided_slice %3 {offsets = [2, 0], sizes = [1, 32], strides = [1, 1]} : vector<3x32xf32> to vector<1x32xf32>
    %35 = vector.broadcast %34 : vector<1x32xf32> to vector<8x32xf32>
    %36 = arith.addf %33, %35 : vector<8x32xf32>
    %c0_15 = arith.constant 0 : index
    %c0_16 = arith.constant 0 : index
    %37 = vector.load %arg6[%c0_15, %c0_16] : memref<8x32xf32, #tpu.memory_space<vmem>>, vector<8x32xf32>
    tpu.vector_store %arg6[%c0_15, %c0_16], %36 {strides = array<i32>} : memref<8x32xf32, #tpu.memory_space<vmem>>, vector<8x32xf32>,
    return
  }
  func.func @transform_0(%arg0: i32) -> (i32, i32) {
    %c0_i32 = arith.constant 0 : i32
    %c0_i32_0 = arith.constant 0 : i32
    return %arg0, %c0_i32 : i32, i32
  }
  func.func @transform_1(%arg0: i32) -> (i32, i32) {
    %c0_i32 = arith.constant 0 : i32
    %c0_i32_0 = arith.constant 0 : i32
    %c0_i32_1 = arith.constant 0 : i32
    return %c0_i32, %c0_i32_0 : i32, i32
  }
  func.func @transform_2(%arg0: i32) -> (i32, i32) {
    %c0_i32 = arith.constant 0 : i32
    %c0_i32_0 = arith.constant 0 : i32
    %c0_i32_1 = arith.constant 0 : i32
    return %c0_i32, %c0_i32_0 : i32, i32
  }
  func.func @transform_3(%arg0: i32) -> (i32, i32) {
    %c0_i32 = arith.constant 0 : i32
    %c0_i32_0 = arith.constant 0 : i32
    return %arg0, %c0_i32 : i32, i32
  }
  func.func @transform_4(%arg0: i32) -> (i32, i32) {
    %c0_i32 = arith.constant 0 : i32
    %c0_i32_0 = arith.constant 0 : i32
    return %arg0, %c0_i32 : i32, i32
  }
  func.func @transform_5(%arg0: i32) -> (i32, i32) {
    %c0_i32 = arith.constant 0 : i32
    %c0_i32_0 = arith.constant 0 : i32
    return %arg0, %c0_i32 : i32, i32
  }
}

module attributes {stable_mosaic.version = 11 : i64} {
  func.func @_self_output_kernel(%arg0: i32, %arg1: memref<8x32xf32, #tpu.memory_space<vmem>>, %arg2: memref<32x32xf32, #tpu.memory_space<vmem>>, %arg3: memref<3x32xf32, #tpu.memory_space<vmem>>, %arg4: memref<8x32xf32, #tpu.memory_space<vmem>>, %arg5: memref<8x32xf32, #tpu.memory_space<vmem>>, %arg6: memref<8x32xf32, #tpu.memory_space<vmem>>) attributes {dimension_semantics = [#tpu.dimension_semantics<parallel>], iteration_bounds = array<i64: 2>, scalar_prefetch = 0 : i64, scratch_operands = 0 : i64, tpu.core_type = #tpu.core_type<tc>, window_params = [{transform_indices = @transform_0, window_bounds = array<i64: 8, 32>}, {pipeline_mode = #tpu.pipeline_mode<synchronous>, transform_indices = @transform_1, window_bounds = array<i64: 32, 32>}, {pipeline_mode = #tpu.pipeline_mode<synchronous>, transform_indices = @transform_2, window_bounds = array<i64: 3, 32>}, {transform_indices = @transform_3, window_bounds = array<i64: 8, 32>}, {transform_indices = @transform_4, window_bounds = array<i64: 8, 32>}, {transform_indices = @transform_5, window_bounds = array<i64: 8, 32>}]} {
    %c0 = arith.constant 0 : index
    %c0_0 = arith.constant 0 : index
    %0 = vector.load %arg1[%c0, %c0_0] : memref<8x32xf32, #tpu.memory_space<vmem>>, vector<8x32xf32>
    %c0_1 = arith.constant 0 : index
    %c0_2 = arith.constant 0 : index
    %1 = vector.load %arg2[%c0_1, %c0_2] : memref<32x32xf32, #tpu.memory_space<vmem>>, vector<32x32xf32>
    %cst = arith.constant dense<0.000000e+00> : vector<8x32xf32>
    %2 = tpu.matmul %0, %1, %cst {dimension_numbers = #tpu.dot_dimension_numbers<[1], [0], [0], [1], [0, 0, 1, 1], [], []>} : vector<8x32xf32>, vector<32x32xf32>, vector<8x32xf32> -> vector<8x32xf32>
    %c0_3 = arith.constant 0 : index
    %c0_4 = arith.constant 0 : index
    %3 = vector.load %arg3[%c0_3, %c0_4] : memref<3x32xf32, #tpu.memory_space<vmem>>, vector<3x32xf32>
    %4 = vector.extract_strided_slice %3 {offsets = [0, 0], sizes = [1, 32], strides = [1, 1]} : vector<3x32xf32> to vector<1x32xf32>
    %5 = vector.broadcast %4 : vector<1x32xf32> to vector<8x32xf32>
    %6 = arith.addf %2, %5 : vector<8x32xf32>
    %c0_5 = arith.constant 0 : index
    %c0_6 = arith.constant 0 : index
    %7 = vector.load %arg4[%c0_5, %c0_6] : memref<8x32xf32, #tpu.memory_space<vmem>>, vector<8x32xf32>
    %8 = arith.addf %6, %7 : vector<8x32xf32>
    %c0_7 = arith.constant 0 : index
    %c0_8 = arith.constant 0 : index
    %9 = vector.load %arg5[%c0_7, %c0_8] : memref<8x32xf32, #tpu.memory_space<vmem>>, vector<8x32xf32>
    %10 = arith.addf %8, %9 : vector<8x32xf32>
    %cst_9 = arith.constant dense<0.000000e+00> : vector<8xf32>
    %11 = vector.multi_reduction <add>, %10, %cst_9 [1] : vector<8x32xf32> to vector<8xf32>
    %12 = vector.shape_cast %11 : vector<8xf32> to vector<8x1xf32>
    %13 = arith.mulf %10, %10 : vector<8x32xf32>
    %cst_10 = arith.constant dense<0.000000e+00> : vector<8xf32>
    %14 = vector.multi_reduction <add>, %13, %cst_10 [1] : vector<8x32xf32> to vector<8xf32>
    %15 = vector.shape_cast %14 : vector<8xf32> to vector<8x1xf32>
    %cst_11 = arith.constant 3.125000e-02 : f32
    %16 = vector.broadcast %cst_11 : f32 to vector<8x1xf32>
    %17 = arith.mulf %12, %16 : vector<8x1xf32>
    %cst_12 = arith.constant 3.125000e-02 : f32
    %18 = vector.broadcast %cst_12 : f32 to vector<8x1xf32>
    %19 = arith.mulf %15, %18 : vector<8x1xf32>
    %20 = arith.mulf %17, %17 : vector<8x1xf32>
    %21 = arith.subf %19, %20 : vector<8x1xf32>
    %cst_13 = arith.constant 0.000000e+00 : f32
    %22 = vector.broadcast %cst_13 : f32 to vector<8x1xf32>
    %23 = arith.maximumf %21, %22 : vector<8x1xf32>
    %cst_14 = arith.constant 9.99999996E-13 : f32
    %24 = vector.broadcast %cst_14 : f32 to vector<8x1xf32>
    %25 = arith.addf %23, %24 : vector<8x1xf32>
    %26 = math.rsqrt %25 : vector<8x1xf32>
    %27 = vector.broadcast %17 : vector<8x1xf32> to vector<8x32xf32>
    %28 = arith.subf %10, %27 : vector<8x32xf32>
    %29 = vector.extract_strided_slice %3 {offsets = [1, 0], sizes = [1, 32], strides = [1, 1]} : vector<3x32xf32> to vector<1x32xf32>
    %30 = vector.broadcast %26 : vector<8x1xf32> to vector<8x32xf32>
    %31 = vector.broadcast %29 : vector<1x32xf32> to vector<8x32xf32>
    %32 = arith.mulf %30, %31 : vector<8x32xf32>
    %33 = arith.mulf %28, %32 : vector<8x32xf32>
    %34 = vector.extract_strided_slice %3 {offsets = [2, 0], sizes = [1, 32], strides = [1, 1]} : vector<3x32xf32> to vector<1x32xf32>
    %35 = vector.broadcast %34 : vector<1x32xf32> to vector<8x32xf32>
    %36 = arith.addf %33, %35 : vector<8x32xf32>
    %c0_15 = arith.constant 0 : index
    %c0_16 = arith.constant 0 : index
    %37 = vector.load %arg6[%c0_15, %c0_16] : memref<8x32xf32, #tpu.memory_space<vmem>>, vector<8x32xf32>
    tpu.vector_store %arg6[%c0_15, %c0_16], %36 {strides = array<i32>} : memref<8x32xf32, #tpu.memory_space<vmem>>, vector<8x32xf32>,
    return
  }
  func.func @transform_0(%arg0: i32) -> (i32, i32) {
    %c0_i32 = arith.constant 0 : i32
    %c0_i32_0 = arith.constant 0 : i32
    return %arg0, %c0_i32 : i32, i32
  }
  func.func @transform_1(%arg0: i32) -> (i32, i32) {
    %c0_i32 = arith.constant 0 : i32
    %c0_i32_0 = arith.constant 0 : i32
    %c0_i32_1 = arith.constant 0 : i32
    return %c0_i32, %c0_i32_0 : i32, i32
  }
  func.func @transform_2(%arg0: i32) -> (i32, i32) {
    %c0_i32 = arith.constant 0 : i32
    %c0_i32_0 = arith.constant 0 : i32
    %c0_i32_1 = arith.constant 0 : i32
    return %c0_i32, %c0_i32_0 : i32, i32
  }
  func.func @transform_3(%arg0: i32) -> (i32, i32) {
    %c0_i32 = arith.constant 0 : i32
    %c0_i32_0 = arith.constant 0 : i32
    return %arg0, %c0_i32 : i32, i32
  }
  func.func @transform_4(%arg0: i32) -> (i32, i32) {
    %c0_i32 = arith.constant 0 : i32
    %c0_i32_0 = arith.constant 0 : i32
    return %arg0, %c0_i32 : i32, i32
  }
  func.func @transform_5(%arg0: i32) -> (i32, i32) {
    %c0_i32 = arith.constant 0 : i32
    %c0_i32_0 = arith.constant 0 : i32
    return %arg0, %c0_i32 : i32, i32
  }
}

</mosaic_0001>

<bundles_post_ra>
// kernel: tpu_custom_call.1
= control target key start
LH: loop header
LB: loop body
LE: loop exit
PB: predicated region body
PF: predicated region fallthrough
CT: control target
= control target key end

     0   :  { %s1202_s0 = inlined_call_operand.hbm [shape: f32[16,32], index: 0, kind: input, shape index: {}]   ;;  %s1203_s1 = inlined_call_operand.hbm [shape: f32[32,32], index: 1, kind: input, shape index: {}]   ;;  %s1204_s2 = inlined_call_operand.vmem [shape: f32[3,32], index: 2, kind: input, shape index: {}]   ;;  %s1205_s3 = inlined_call_operand.hbm [shape: f32[16,32], index: 3, kind: input, shape index: {}]   ;;  %s1206_s4 = inlined_call_operand.hbm [shape: f32[16,32], index: 4, kind: input, shape index: {}]   ;;  %s1207_s5 = inlined_call_operand.hbm [shape: f32[16,32], index: 5, kind: output, shape index: {}]  }
   0x1   :  { %1216 = sst [smem:[#allocation14_spill]] %s1202_s0 }
   0x2   :  { %1217 = sst [smem:[#allocation15_spill]] %s1205_s3 }
   0x3   :  { %10 = vsyncpa [#allocation3], 0 }
   0x4   :  { %12 = vsyncpa [#allocation3 + $0x1], 0 }
   0x5   :  { %13 = vsyncpa [#allocation6], 0 }
   0x6   :  { %14 = vsyncpa [#allocation4], 0 }
   0x7   :  { %16 = vsyncpa [#allocation4 + $0x1], 0  ;;  %s923_s18 = smov 0   ;;  %s925_s19 = smov 0  }
   0x8   :  { %s927_s20 = smov 0   ;;  %s929_s21 = smov 0  }
   0x9 LB: > { %s944_s22 = sadd.s32 1, %s881_s21   ;;  %s29_s23 = sadd.s32 1, %s877_s20  ;;  %s881_s21 = sphi %s929_s21, %s1241_s21   ;;  %s877_s20 = sphi %s927_s20, %s1240_s20   ;;  %s873_s19 = sphi %s925_s19, %s1239_s19   ;;  %s869_s18 = sphi %s923_s18, %s1238_s18  }
   0xa   : > { %s26_s24 = ssub.s32 %s881_s21, %s944_s22  ;;  %p1208_p0 = scmp.ne.s32.totalorder %s877_s20, %s873_s19 }
   0xb   : > { %p27_p1 = scmp.eq.s32.totalorder %s26_s24, 0  ;;  %p37_p2 = scmp.eq.s32.totalorder %s881_s21, 0 }
   0xc   : > { %p646_p4 = scmp.lt.s32.totalorder %s881_s21, 2  ;;  %s202_s26 = sand.u32 1, %s881_s21  }
   0xd   : > { %s955_s25 = scalar_select %p27_p1, %s877_s20, %s29_s23  }
   0xe   : > { %p38_p5 = por %p37_p2, %p1208_p0  ;;  %s204_s27 = sand.u32 1, %s877_s20  }
   0xf   : > { %s962_s28 = sshll.u32 %s204_s27, 3  ;;  %s965_s29 = sshll.u32 %s881_s21, 7 }
  0x10   : > { %s1218_s0 = sld [smem:[#allocation14_spill]]  ;;  %s206_s8 = scalar_lea.vmem [#allocation2], %s962_s28 }
  0x11   : > { %s213_s9 = sshll.u32 %s206_s8, 4  ;;  %p974_p6 = pnand %p646_p4, %p38_p5  ;;  %s978_s9 = int_to_ptr.vmem [resolvable:$true] %s213_s9 }
  0x12   : > { %s1220_s3 = sld [smem:[#allocation15_spill]]  ;;  %s986_s14 = scalar_lea.sflag [#allocation3], %s202_s26 }
  0x13   : > { %s1219_s10 = scalar_select %p974_p6, 1, 0 }
  0x14   : > { %p992_p8 = pneg %p974_p6 }
  0x16   : > { %s971_s7 = scalar_lea.hbm %s1218_s0, %s965_s29  ;;  %s694_s24 = scalar_lea.hbm %s1218_s0, 256 }
  0x17   : > { %s689_s15 = scalar_lea.hbm %s971_s7, 128  ;;  %p695_p11 = scmp.lt.u32.totalorder %s971_s7, %s1218_s0 }
  0x18   : > { %s984_s13 = scalar_lea.hbm %s1220_s3, %s965_s29  ;;  %p690_p7 = scmp.ne.s32.totalorder %s971_s7, %s689_s15 }
  0x19   : > { %p696_p12 = scmp.lt.u32.totalorder %s694_s24, %s689_s15  ;;  %p698_p1 = scmp.lt.u32.totalorder %s689_s15, %s971_s7 }
  0x1a   : > { %p692_p9 = pnand %p992_p8, %p690_p7 }
  0x1b   : > { %p697_p13 = por %p696_p12, %p695_p11 }
  0x1c   : > { %p693_p10 = pneg %p692_p9 }
  0x1d   : > { %p699_p2 = por %p698_p1, %p697_p13 }
  0x1f   : > { %p700_p4 = pnand %p699_p2, %p693_p10 }
  0x21   : > { %703 = shalt.err (!%p700_p4)
}
  0x22   : > { %s704_s26 = scalar_lea.vmem %s978_s9, 128  ;;  %s883_s6 = smov [#allocation2]  }
  0x23   : > { %p705_p5 = scmp.ne.s32.totalorder %s978_s9, %s704_s26  ;;  %s709_s8 = sshll.u32 %s883_s6, 4  ;;  %s710_s8 = int_to_ptr.vmem [resolvable:$false] %s709_s8 }
  0x24   : > { %s711_s11 = scalar_lea.vmem %s710_s8, 256  ;;  %p712_p3 = scmp.lt.s32.totalorder %s978_s9, %s710_s8 }
  0x25   : > { %p707_p7 = pnand %p705_p5, %p992_p8  ;;  %p713_p0 = scmp.lt.s32.totalorder %s711_s11, %s704_s26 }
  0x27   : > { %p708_p9 = pneg %p707_p7  ;;  %p714_p11 = por %p713_p0, %p712_p3 }
  0x29   : > { %p715_p12 = pnand %p714_p11, %p708_p9 }
  0x2b   : > { %718 = shalt.err (!%p715_p12)
}
  0x2c   : > { %634 = dma.hbm_to_vmem [thread:$0]  (!%p974_p6), %s971_s7, 128, %s978_s9, %s986_s14  }
  0x2d   : > { %s224_s12 = scalar_lea.vmem [#allocation7], %s962_s28  ;;  %s719_s17 = scalar_lea.hbm %s984_s13, 128 }
  0x2e   : > { %s231_s15 = sshll.u32 %s224_s12, 4  ;;  %p720_p10 = scmp.ne.s32.totalorder %s984_s13, %s719_s17  ;;  %s232_s15 = int_to_ptr.vmem [resolvable:$true] %s231_s15 }
  0x2f   : > { %s724_s27 = scalar_lea.hbm %s1220_s3, 256  ;;  %p725_p13 = scmp.lt.u32.totalorder %s984_s13, %s1220_s3 }
  0x30   : > { %p722_p0 = pnand %p720_p10, %p992_p8  ;;  %p726_p1 = scmp.lt.u32.totalorder %s724_s27, %s719_s17 }
  0x31   : > { %p728_p4 = scmp.lt.u32.totalorder %s719_s17, %s984_s13 }
  0x32   : > { %p723_p3 = pneg %p722_p0  ;;  %p727_p2 = por %p726_p1, %p725_p13 }
  0x34   : > { %p729_p5 = por %p728_p4, %p727_p2 }
  0x36   : > { %p730_p7 = pnand %p729_p5, %p723_p3 }
  0x38   : > { %733 = shalt.err (!%p730_p7)
}
  0x39   : > { %s734_s7 = scalar_lea.vmem %s232_s15, 128  ;;  %s884_s9 = smov [#allocation7]  }
  0x3a   : > { %p735_p9 = scmp.ne.s32.totalorder %s232_s15, %s734_s7  ;;  %s739_s6 = sshll.u32 %s884_s9, 4  ;;  %s740_s6 = int_to_ptr.vmem [resolvable:$false] %s739_s6 }
  0x3b   : > { %s741_s8 = scalar_lea.vmem %s740_s6, 256  ;;  %p742_p10 = scmp.lt.s32.totalorder %s232_s15, %s740_s6 }
  0x3c   : > { %p737_p11 = pnand %p735_p9, %p992_p8  ;;  %p743_p0 = scmp.lt.s32.totalorder %s741_s8, %s734_s7 }
  0x3e   : > { %p738_p12 = pneg %p737_p11  ;;  %p744_p6 = por %p743_p0, %p742_p10 }
  0x40   : > { %p745_p1 = pnand %p744_p6, %p738_p12 }
  0x42   : > { %748 = shalt.err (!%p745_p1)
}
  0x43   : > { %p1222_p13 = scmp.ne.s32.totalorder %s1219_s10, 0  ;;  %s1036_s11 = sadd.s32 4294967295, %s881_s21  }
  0x44   : > { %s572_s12 = sadd.s32 4294967294, %s881_s21   ;;  %p42_p6 = scmp.ne.s32.totalorder %s873_s19, %s869_s18 }
  0x45   : > { %637 = dma.hbm_to_vmem [thread:$0]  (!%p1222_p13), %s984_s13, 128, %s232_s15, %s986_s14  }
  0x46   : > { %p1211_p3 = scmp.eq.s32.totalorder %s1036_s11, 0  ;;  %p160_p2 = scmp.eq.s32.totalorder %s1036_s11, 1 }
  0x47   : > { %p166_p4 = scmp.eq.s32.totalorder %s572_s12, 1  ;;  %p573_p7 = scmp.ge.s32.totalorder %s881_s21, 1 }
  0x48   : > { %p1045_p5 = por %p1211_p3, %p42_p6  ;;  %p1224_p9 = scmp.ne.s32.totalorder %s877_s20, %s873_s19 }
  0x49   : > { %p1057_p12 = por %p166_p4, %p42_p6  ;;  %p173_p10 = scmp.lt.s32.totalorder %s881_s21, 3 }
  0x4a   : > { %s1223_s17 = scalar_select %p1045_p5, 1, 0 }
  0x4b   : > { %p1053_p11 = por %p160_p2, %p1224_p9  ;;  %p1062_p0 = pnand %p573_p7, %p173_p10 }
  0x4c   : > { %s1226_s15 = scalar_select %p1057_p12, 1, 0 }
  0x4d   : > { %s1225_s13 = scalar_select %p1053_p11, 1, 0 }
  0x4e   : > { %s1227_s23 = scalar_select %p1062_p0, 1, 0 }
  0x4f   : > { %s885_s24 = smov [#allocation5]   ;;  %p627_p1 = pneg %p1062_p0 }
  0x50   : > { %s185_s27 = sshll.u32 %s885_s24, 4  ;;  %s1074_s7 = scalar_lea.hbm %s1206_s4, %s965_s29  ;;  %s1066_s27 = int_to_ptr.vmem [resolvable:$true] %s185_s27 }
  0x51   : > { %s242_s9 = scalar_lea.vmem [#allocation8], %s962_s28  ;;  %p1079_p6 = pnand %p627_p1, %p1211_p3 }
  0x52   : > { %s249_s6 = sshll.u32 %s242_s9, 4  ;;  %s749_s12 = scalar_lea.hbm %s1074_s7, 128  ;;  %s250_s6 = int_to_ptr.vmem [resolvable:$true] %s249_s6 }
  0x53   : > { %s1228_s8 = scalar_select %p1079_p6, 1, 0 }
  0x54   : > { %p750_p2 = scmp.ne.s32.totalorder %s1074_s7, %s749_s12  ;;  %s754_s30 = scalar_lea.hbm %s1206_s4, 256 }
  0x55   : > { %p755_p9 = scmp.lt.u32.totalorder %s1074_s7, %s1206_s4  ;;  %p756_p10 = scmp.lt.u32.totalorder %s754_s30, %s749_s12 }
  0x56   : > { %p752_p4 = pnand %p750_p2, %p992_p8  ;;  %p758_p1 = scmp.lt.u32.totalorder %s749_s12, %s1074_s7 }
  0x57   : > { %p757_p12 = por %p756_p10, %p755_p9 }
  0x58   : > { %p753_p7 = pneg %p752_p4 }
  0x59   : > { %p759_p3 = por %p758_p1, %p757_p12 }
  0x5b   : > { %p760_p11 = pnand %p759_p3, %p753_p7 }
  0x5d   : > { %763 = shalt.err (!%p760_p11)
}
  0x5e   : > { %s764_s28 = scalar_lea.vmem %s250_s6, 128  ;;  %s886_s9 = smov [#allocation8]  }
  0x5f   : > { %p765_p5 = scmp.ne.s32.totalorder %s250_s6, %s764_s28  ;;  %s769_s3 = sshll.u32 %s886_s9, 4  ;;  %s770_s3 = int_to_ptr.vmem [resolvable:$false] %s769_s3 }
  0x60   : > { %s771_s24 = scalar_lea.vmem %s770_s3, 256  ;;  %p772_p0 = scmp.lt.s32.totalorder %s250_s6, %s770_s3 }
  0x61   : > { %p767_p2 = pnand %p765_p5, %p992_p8  ;;  %p773_p6 = scmp.lt.s32.totalorder %s771_s24, %s764_s28 }
  0x63   : > { %p768_p4 = pneg %p767_p2  ;;  %p774_p13 = por %p773_p6, %p772_p0 }
  0x65   : > { %p775_p9 = pnand %p774_p13, %p768_p4 }
  0x67   : > { %778 = shalt.err (!%p775_p9)
}
  0x68   : > { %p1229_p10 = scmp.ne.s32.totalorder %s1219_s10, 0  ;;  %s779_s16 = scalar_lea.hbm %s1203_s1, 512 }
  0x69   : > { %p780_p8 = scmp.ne.s32.totalorder %s1203_s1, %s779_s16  ;;  %p1230_p3 = scmp.ne.s32.totalorder %s1228_s8, 0 }
  0x6a   : > { %640 = dma.hbm_to_vmem [thread:$0]  (!%p1229_p10), %s1074_s7, 128, %s250_s6, %s986_s14  }
  0x6b   : > { %p781_p5 = pneg %p1230_p3  ;;  %p786_p13 = scmp.lt.u32.totalorder %s779_s16, %s1203_s1 }
  0x6d   : > { %p782_p11 = pnand %p781_p5, %p780_p8 }
  0x6f   : > { %p783_p12 = pneg %p782_p11 }
  0x71   : > { %p788_p0 = pnand %p786_p13, %p783_p12 }
  0x73   : > { %791 = shalt.err (!%p788_p0)
}
  0x74   : > { %s792_s10 = scalar_lea.vmem %s1066_s27, 512  ;;  %p800_p2 = scmp.lt.s32.totalorder %s1066_s27, %s1066_s27 }
  0x75   : > { %p793_p6 = scmp.ne.s32.totalorder %s1066_s27, %s792_s10  ;;  %p801_p4 = scmp.lt.s32.totalorder %s792_s10, %s792_s10 }
  0x77   : > { %p795_p7 = pnand %p793_p6, %p781_p5  ;;  %p802_p9 = por %p801_p4, %p800_p2 }
  0x79   : > { %p796_p1 = pneg %p795_p7 }
  0x7b   : > { %p803_p10 = pnand %p802_p9, %p796_p1 }
  0x7d   : > { %806 = shalt.err (!%p803_p10)
}
  0x7e   : > { %s887_s14 = smov 128   ;;  %s888_s7 = smov 8  }
  0x7f   : > { %630 = dma.hbm_to_vmem [thread:$0]  (!%p1230_p3), %s1203_s1, 512, %s1066_s27, [#allocation6], %s887_s14, %s887_s14, %s888_s7  }
  0x80   : > { %p1231_p8 = scmp.ne.s32.totalorder %s1227_s23, 0 }
  0x81   : > { %s260_s9 = sand.u32 (!%p1231_p8), 1, %s1036_s11   ;;  %s262_s24 = sand.u32 (!%p1231_p8), 1, %s873_s19  }
  0x82   : > { %258 = sbr.rel (%p1231_p8) target bundleno = 558 (0x22e), region = 40  ;;  %s1128_s0 = sshll.u32 (!%p1231_p8), %s262_s24, 3 }
  0x83   : > { %s261_s12 = scalar_lea.sflag (!%p1231_p8), [#allocation3], %s260_s9  ;;  %s264_s16 = scalar_lea.vmem (!%p1231_p8), [#allocation2], %s1128_s0 }
  0x84   : > { %p1232_p5 = scmp.ne.s32.totalorder (!%p1231_p8), %s1223_s17, 0 }
  0x89   : > { %852 = dma.done.wait (%p1232_p5), %s261_s12, 128  }
  0x8a   : > { %854 = vsyncadd (%p1232_p5), %s261_s12, 4294967168  ;;  %p1233_p3 = scmp.eq.s32.totalorder %s1036_s11, 0 }
  0x8c   : > { %856 = dma.done.wait (%p1233_p3), [#allocation6], 512   ;;  %p1234_p11 = pmov %p1233_p3 }
  0x8d   : > { %s277_s23 = scalar_lea.vmem [#allocation7], %s1128_s0 }
  0x8e   : > { %858 = vsyncadd (%p1234_p11), [#allocation6], 4294966784 }
  0x8f   : > { %860 = dma.done.wait (%p1232_p5), %s261_s12, 256  }
  0x90   : > { %862 = vsyncadd (%p1232_p5), %s261_s12, 4294967040  ;;  %v889_v0 = vmov 0.0|0.0   ;;  %vm890_vm0 = vmmov 0   ;;  %v891_v1 = vmov 0.0   ;;  %v324_v2 = vld [vmem:[#allocation5] sm:$0xff]  ;;  %v325_v3 = vld [vmem:[#allocation5 + $0x8] sm:$0xff]  ;;  %v329_v9 = vlaneseq }
  0x91   : > { %609 = vmatprep.subr.bf16.mxu0 %v889_v0  ;;  %606 = vmatprep.mubr.msk.f32.mxu0 %vm890_vm0, %v891_v1  ;;  %v326_v4 = vld [vmem:[#allocation5 + $0x10] sm:$0xff]  ;;  %v610_v5 = vpack.c.bf16 %v325_v3, %v324_v2  ;;  %v327_v6 = vld [vmem:[#allocation5 + $0x18] sm:$0xff]  ;;  %vm333_vm1 = vcmask 261120   ;;  %v407_v15 = vld [vmem:[%s277_s23] sm:$0xff]  ;;  %s286_s8 = scalar_lea.vmem [#allocation8], %s1128_s0  ;;  %s590_s29 = sshll.u32 %s1036_s11, 7 }
  0x92   : > { %v613_v7 = vpack.c.bf16 %v327_v6, %v326_v4  ;;  %v323_v8 = vld [vmem:[%s264_s16] sm:$0xff]  ;;  %v330_v10 = vshrl.u32 %v329_v9, 7  ;;  %s322_s30 = scalar_lea.vmem [#allocation9], %s1128_s0  ;;  %s1156_s14 = scalar_lea.hbm %s1207_s5, %s590_s29 }
  0x93   : > { %611 = vmatpush3.bf16.msra.mxu0 %v610_v5  ;;  %v328_v12 = vld [vmem:[%s1204_s2] sm:$0x7]  ;;  %s452_s3 = sshll.u32 %s322_s30, 4  ;;  %s439_s7 = scalar_lea.sflag [#allocation4], %s262_s24  ;;  %s1158_s3 = int_to_ptr.vmem [resolvable:$true] %s452_s3 }
  0x94   : > { %612 = vmatprep.subr.bf16.mxu0 %v889_v0  ;;  %v331_v11 = vsub.s32 0, %v330_v10  ;;  %v409_v18 = vld [vmem:[%s286_s8] sm:$0xff]  ;;  %v428_v32 = vsub.s32 1, %v330_v10  ;;  %v434_v34 = vsub.s32 2, %v330_v10  ;;  %s807_s6 = scalar_lea.vmem %s1158_s3, 128  ;;  %p1235_p13 = scmp.ne.s32.totalorder %s1225_s13, 0 }
  0x95   : > { %p808_p12 = scmp.ne.s32.totalorder %s1158_s3, %s807_s6  ;;  %s892_s11 = smov [#allocation9]  }
  0x96   : > { %v332_v13 = vrot.slane %v328_v12, %v331_v11  ;;  %v429_v33 = vrot.slane %v328_v12, %v428_v32  ;;  %v435_v36 = vrot.slane %v328_v12, %v434_v34  ;;  %s811_s28 = sshll.u32 %s892_s11, 4  ;;  %s812_s28 = int_to_ptr.vmem [resolvable:$false] %s811_s28 }
  0x97   : > { %614 = vmatpush3.bf16.msra.mxu0 %v613_v7  ;;  %p809_p0 = pnand %p808_p12, %p1235_p13  ;;  %s813_s9 = scalar_lea.vmem %s812_s28, 256 }
  0x98   : > { %p814_p7 = scmp.lt.s32.totalorder %s1158_s3, %s812_s28  ;;  %p815_p1 = scmp.lt.s32.totalorder %s813_s9, %s807_s6 }
  0x99   : > { %p810_p6 = pneg %p809_p0 }
  0x9a   : > { %607 = vmatmul.mubr.msk.f32.vlgmr.msra.gmra.mrb[0].mxu0 %vm333_vm1, %v323_v8  ;;  %p816_p2 = por %p815_p1, %p814_p7 }
  0x9c   : > { %p817_p4 = pnand %p816_p2, %p810_p6 }
 0x16d   : > { %v403_v14 = vpop.f32.mrb[0].mxu0 }
 0x16e   : > { %v404_v16 = vadd.f32 %v403_v14, %v332_v13  ;;  %v608_v17 = vpop.f32.mrb[1].mxu0 }
 0x170   : > { %v408_v19 = vadd.f32 %v407_v15, %v404_v16 }
 0x172   : > { %v410_v20 = vadd.f32 %v409_v18, %v408_v19 }
 0x174   : > { %v411_v21 = vsel %vm333_vm1, %v410_v20, 0.0  ;;  %v414_v22 = vmul.f32 %v410_v20, %v410_v20 }
 0x175   : > { %412 = vadd.xlane.f32.xlu0 %v411_v21 }
 0x176   : > { %v415_v23 = vsel %vm333_vm1, %v414_v22, 0.0 }
 0x179   : > { %416 = vadd.xlane.f32.xlu0 %v415_v23 }
 0x202   : > { %v413_v24 = vpop.xlane.xlu0 %412 }
 0x203   : > { %v418_v25 = vmul.f32 0.03125, %v413_v24 }
 0x205   : > { %v420_v27 = vmul.f32 %v418_v25, %v418_v25  ;;  %v425_v37 = vsub.f32 %v410_v20, %v418_v25 }
 0x206   : > { %v417_v26 = vpop.xlane.xlu0 %416 }
 0x207   : > { %v419_v28 = vmul.f32 0.03125, %v417_v26 }
 0x209   : > { %v421_v29 = vsub.f32 %v419_v28, %v420_v27 }
 0x20b   : > { %v422_v30 = vmax.f32 %v421_v29, 0.0 }
 0x20d   : > { %v423_v31 = vadd.f32 1e-12, %v422_v30 }
 0x20f   : > { %687 = vrsqrt.f32 %v423_v31 }
 0x219   : > { %v688_v35 = vpop.eup %687 }
 0x21a   : > { %v430_v38 = vmul.f32 %v688_v35, %v429_v33 }
 0x21c   : > { %v431_v39 = vmul.f32 %v430_v38, %v425_v37 }
 0x21e   : > { %v436_v40 = vadd.f32 %v435_v36, %v431_v39 }
 0x220   : > { %437 = vst.msk [vmem:[%s322_s30] sm:$0xff] %vm333_vm1, %v436_v40 }
 0x221   : > { %820 = shalt.err (!%p817_p4)
}
 0x222   : > { %s821_s24 = scalar_lea.hbm %s1156_s14, 128  ;;  %s825_s16 = scalar_lea.hbm %s1207_s5, 256 }
 0x223   : > { %p822_p9 = scmp.ne.s32.totalorder %s1156_s14, %s821_s24  ;;  %p826_p5 = scmp.lt.u32.totalorder %s1156_s14, %s1207_s5 }
 0x224   : > { %p827_p3 = scmp.lt.u32.totalorder %s825_s16, %s821_s24  ;;  %p829_p12 = scmp.lt.u32.totalorder %s821_s24, %s1156_s14 }
 0x225   : > { %p823_p10 = pnand %p822_p9, %p1235_p13 }
 0x226   : > { %p828_p11 = por %p827_p3, %p826_p5 }
 0x227   : > { %p824_p8 = pneg %p823_p10 }
 0x228   : > { %p830_p0 = por %p829_p12, %p828_p11 }
 0x22a   : > { %p831_p6 = pnand %p830_p0, %p824_p8 }
 0x22c   : > { %834 = shalt.err (!%p831_p6)
}
 0x22d   : > { %625 = dma.vmem_to_hbm [thread:$0]  (%p1235_p13), %s1158_s3, 128, %s1156_s14, %s439_s7  }
 0x22e PF: > { %s464_s27 = sand.u32 1, %s869_s18   ;;  %p1236_p7 = scmp.ne.s32.totalorder %s1226_s15, 0 }
 0x22f   : > { %p1237_p1 = scmp.ge.s32.totalorder %s881_s21, 2  ;;  %s465_s8 = scalar_lea.sflag [#allocation4], %s464_s27 }
 0x231   : > { %p642_p2 = pnand %p1237_p1, %p1236_p7 }
 0x233   : > { %864 = dma.done.wait (!%p642_p2), %s465_s8, 128  }
 0x234   : > { %866 = vsyncadd (!%p642_p2), %s465_s8, 4294967168  ;;  %p19_p4 = scmp.ge.s32.totalorder %s944_s22, 4   ;;  %s1238_s18 = smov %s873_s19 }
 0x235   : > { %s1239_s19 = smov %s877_s20  ;;  %s1240_s20 = smov %s955_s25 }
 0x236   : > { %s1241_s21 = smov %s944_s22  ;;  %21 = sbr.rel (!%p19_p4) target bundleno = 9 (0x9), region = 111 }
 0x23d   :  { %470 = vsyncpa [#allocation3], 1 }
 0x23e   :  { %472 = vsyncpa [#allocation3 + $0x1], 1 }
 0x23f   :  { %473 = vsyncpa [#allocation6], 1 }
 0x240   :  { %474 = vsyncpa [#allocation4], 1 }
 0x241   :  { %476 = vsyncpa [#allocation4 + $0x1], 1 }

// kernel: tpu_custom_call.1
= control target key start
LH: loop header
LB: loop body
LE: loop exit
PB: predicated region body
PF: predicated region fallthrough
CT: control target
= control target key end

     0   :  { %s1202_s0 = inlined_call_operand.hbm [shape: f32[16,32], index: 0, kind: input, shape index: {}]   ;;  %s1203_s1 = inlined_call_operand.hbm [shape: f32[32,32], index: 1, kind: input, shape index: {}]   ;;  %s1204_s2 = inlined_call_operand.vmem [shape: f32[3,32], index: 2, kind: input, shape index: {}]   ;;  %s1205_s3 = inlined_call_operand.hbm [shape: f32[16,32], index: 3, kind: input, shape index: {}]   ;;  %s1206_s4 = inlined_call_operand.hbm [shape: f32[16,32], index: 4, kind: input, shape index: {}]   ;;  %s1207_s5 = inlined_call_operand.hbm [shape: f32[16,32], index: 5, kind: output, shape index: {}]  }
   0x1   :  { %1216 = sst [smem:[#allocation14_spill]] %s1202_s0 }
   0x2   :  { %1217 = sst [smem:[#allocation15_spill]] %s1205_s3 }
   0x3   :  { %10 = vsyncpa [#allocation3], 0 }
   0x4   :  { %12 = vsyncpa [#allocation3 + $0x1], 0 }
   0x5   :  { %13 = vsyncpa [#allocation6], 0 }
   0x6   :  { %14 = vsyncpa [#allocation4], 0 }
   0x7   :  { %16 = vsyncpa [#allocation4 + $0x1], 0  ;;  %s923_s18 = smov 0   ;;  %s925_s19 = smov 0  }
   0x8   :  { %s927_s20 = smov 0   ;;  %s929_s21 = smov 0  }
   0x9 LB: > { %s944_s22 = sadd.s32 1, %s881_s21   ;;  %s29_s23 = sadd.s32 1, %s877_s20  ;;  %s881_s21 = sphi %s929_s21, %s1241_s21   ;;  %s877_s20 = sphi %s927_s20, %s1240_s20   ;;  %s873_s19 = sphi %s925_s19, %s1239_s19   ;;  %s869_s18 = sphi %s923_s18, %s1238_s18  }
   0xa   : > { %s26_s24 = ssub.s32 %s881_s21, %s944_s22  ;;  %p1208_p0 = scmp.ne.s32.totalorder %s877_s20, %s873_s19 }
   0xb   : > { %p27_p1 = scmp.eq.s32.totalorder %s26_s24, 0  ;;  %p37_p2 = scmp.eq.s32.totalorder %s881_s21, 0 }
   0xc   : > { %p646_p4 = scmp.lt.s32.totalorder %s881_s21, 2  ;;  %s202_s26 = sand.u32 1, %s881_s21  }
   0xd   : > { %s955_s25 = scalar_select %p27_p1, %s877_s20, %s29_s23  }
   0xe   : > { %p38_p5 = por %p37_p2, %p1208_p0  ;;  %s204_s27 = sand.u32 1, %s877_s20  }
   0xf   : > { %s962_s28 = sshll.u32 %s204_s27, 3  ;;  %s965_s29 = sshll.u32 %s881_s21, 7 }
  0x10   : > { %s1218_s0 = sld [smem:[#allocation14_spill]]  ;;  %s206_s8 = scalar_lea.vmem [#allocation2], %s962_s28 }
  0x11   : > { %s213_s9 = sshll.u32 %s206_s8, 4  ;;  %p974_p6 = pnand %p646_p4, %p38_p5  ;;  %s978_s9 = int_to_ptr.vmem [resolvable:$true] %s213_s9 }
  0x12   : > { %s1220_s3 = sld [smem:[#allocation15_spill]]  ;;  %s986_s14 = scalar_lea.sflag [#allocation3], %s202_s26 }
  0x13   : > { %s1219_s10 = scalar_select %p974_p6, 1, 0 }
  0x14   : > { %p992_p8 = pneg %p974_p6 }
  0x16   : > { %s971_s7 = scalar_lea.hbm %s1218_s0, %s965_s29  ;;  %s694_s24 = scalar_lea.hbm %s1218_s0, 256 }
  0x17   : > { %s689_s15 = scalar_lea.hbm %s971_s7, 128  ;;  %p695_p11 = scmp.lt.u32.totalorder %s971_s7, %s1218_s0 }
  0x18   : > { %s984_s13 = scalar_lea.hbm %s1220_s3, %s965_s29  ;;  %p690_p7 = scmp.ne.s32.totalorder %s971_s7, %s689_s15 }
  0x19   : > { %p696_p12 = scmp.lt.u32.totalorder %s694_s24, %s689_s15  ;;  %p698_p1 = scmp.lt.u32.totalorder %s689_s15, %s971_s7 }
  0x1a   : > { %p692_p9 = pnand %p992_p8, %p690_p7 }
  0x1b   : > { %p697_p13 = por %p696_p12, %p695_p11 }
  0x1c   : > { %p693_p10 = pneg %p692_p9 }
  0x1d   : > { %p699_p2 = por %p698_p1, %p697_p13 }
  0x1f   : > { %p700_p4 = pnand %p699_p2, %p693_p10 }
  0x21   : > { %703 = shalt.err (!%p700_p4)
}
  0x22   : > { %s704_s26 = scalar_lea.vmem %s978_s9, 128  ;;  %s883_s6 = smov [#allocation2]  }
  0x23   : > { %p705_p5 = scmp.ne.s32.totalorder %s978_s9, %s704_s26  ;;  %s709_s8 = sshll.u32 %s883_s6, 4  ;;  %s710_s8 = int_to_ptr.vmem [resolvable:$false] %s709_s8 }
  0x24   : > { %s711_s11 = scalar_lea.vmem %s710_s8, 256  ;;  %p712_p3 = scmp.lt.s32.totalorder %s978_s9, %s710_s8 }
  0x25   : > { %p707_p7 = pnand %p705_p5, %p992_p8  ;;  %p713_p0 = scmp.lt.s32.totalorder %s711_s11, %s704_s26 }
  0x27   : > { %p708_p9 = pneg %p707_p7  ;;  %p714_p11 = por %p713_p0, %p712_p3 }
  0x29   : > { %p715_p12 = pnand %p714_p11, %p708_p9 }
  0x2b   : > { %718 = shalt.err (!%p715_p12)
}
  0x2c   : > { %634 = dma.hbm_to_vmem [thread:$0]  (!%p974_p6), %s971_s7, 128, %s978_s9, %s986_s14  }
  0x2d   : > { %s224_s12 = scalar_lea.vmem [#allocation7], %s962_s28  ;;  %s719_s17 = scalar_lea.hbm %s984_s13, 128 }
  0x2e   : > { %s231_s15 = sshll.u32 %s224_s12, 4  ;;  %p720_p10 = scmp.ne.s32.totalorder %s984_s13, %s719_s17  ;;  %s232_s15 = int_to_ptr.vmem [resolvable:$true] %s231_s15 }
  0x2f   : > { %s724_s27 = scalar_lea.hbm %s1220_s3, 256  ;;  %p725_p13 = scmp.lt.u32.totalorder %s984_s13, %s1220_s3 }
  0x30   : > { %p722_p0 = pnand %p720_p10, %p992_p8  ;;  %p726_p1 = scmp.lt.u32.totalorder %s724_s27, %s719_s17 }
  0x31   : > { %p728_p4 = scmp.lt.u32.totalorder %s719_s17, %s984_s13 }
  0x32   : > { %p723_p3 = pneg %p722_p0  ;;  %p727_p2 = por %p726_p1, %p725_p13 }
  0x34   : > { %p729_p5 = por %p728_p4, %p727_p2 }
  0x36   : > { %p730_p7 = pnand %p729_p5, %p723_p3 }
  0x38   : > { %733 = shalt.err (!%p730_p7)
}
  0x39   : > { %s734_s7 = scalar_lea.vmem %s232_s15, 128  ;;  %s884_s9 = smov [#allocation7]  }
  0x3a   : > { %p735_p9 = scmp.ne.s32.totalorder %s232_s15, %s734_s7  ;;  %s739_s6 = sshll.u32 %s884_s9, 4  ;;  %s740_s6 = int_to_ptr.vmem [resolvable:$false] %s739_s6 }
  0x3b   : > { %s741_s8 = scalar_lea.vmem %s740_s6, 256  ;;  %p742_p10 = scmp.lt.s32.totalorder %s232_s15, %s740_s6 }
  0x3c   : > { %p737_p11 = pnand %p735_p9, %p992_p8  ;;  %p743_p0 = scmp.lt.s32.totalorder %s741_s8, %s734_s7 }
  0x3e   : > { %p738_p12 = pneg %p737_p11  ;;  %p744_p6 = por %p743_p0, %p742_p10 }
  0x40   : > { %p745_p1 = pnand %p744_p6, %p738_p12 }
  0x42   : > { %748 = shalt.err (!%p745_p1)
}
  0x43   : > { %p1222_p13 = scmp.ne.s32.totalorder %s1219_s10, 0  ;;  %s1036_s11 = sadd.s32 4294967295, %s881_s21  }
  0x44   : > { %s572_s12 = sadd.s32 4294967294, %s881_s21   ;;  %p42_p6 = scmp.ne.s32.totalorder %s873_s19, %s869_s18 }
  0x45   : > { %637 = dma.hbm_to_vmem [thread:$0]  (!%p1222_p13), %s984_s13, 128, %s232_s15, %s986_s14  }
  0x46   : > { %p1211_p3 = scmp.eq.s32.totalorder %s1036_s11, 0  ;;  %p160_p2 = scmp.eq.s32.totalorder %s1036_s11, 1 }
  0x47   : > { %p166_p4 = scmp.eq.s32.totalorder %s572_s12, 1  ;;  %p573_p7 = scmp.ge.s32.totalorder %s881_s21, 1 }
  0x48   : > { %p1045_p5 = por %p1211_p3, %p42_p6  ;;  %p1224_p9 = scmp.ne.s32.totalorder %s877_s20, %s873_s19 }
  0x49   : > { %p1057_p12 = por %p166_p4, %p42_p6  ;;  %p173_p10 = scmp.lt.s32.totalorder %s881_s21, 3 }
  0x4a   : > { %s1223_s17 = scalar_select %p1045_p5, 1, 0 }
  0x4b   : > { %p1053_p11 = por %p160_p2, %p1224_p9  ;;  %p1062_p0 = pnand %p573_p7, %p173_p10 }
  0x4c   : > { %s1226_s15 = scalar_select %p1057_p12, 1, 0 }
  0x4d   : > { %s1225_s13 = scalar_select %p1053_p11, 1, 0 }
  0x4e   : > { %s1227_s23 = scalar_select %p1062_p0, 1, 0 }
  0x4f   : > { %s885_s24 = smov [#allocation5]   ;;  %p627_p1 = pneg %p1062_p0 }
  0x50   : > { %s185_s27 = sshll.u32 %s885_s24, 4  ;;  %s1074_s7 = scalar_lea.hbm %s1206_s4, %s965_s29  ;;  %s1066_s27 = int_to_ptr.vmem [resolvable:$true] %s185_s27 }
  0x51   : > { %s242_s9 = scalar_lea.vmem [#allocation8], %s962_s28  ;;  %p1079_p6 = pnand %p627_p1, %p1211_p3 }
  0x52   : > { %s249_s6 = sshll.u32 %s242_s9, 4  ;;  %s749_s12 = scalar_lea.hbm %s1074_s7, 128  ;;  %s250_s6 = int_to_ptr.vmem [resolvable:$true] %s249_s6 }
  0x53   : > { %s1228_s8 = scalar_select %p1079_p6, 1, 0 }
  0x54   : > { %p750_p2 = scmp.ne.s32.totalorder %s1074_s7, %s749_s12  ;;  %s754_s30 = scalar_lea.hbm %s1206_s4, 256 }
  0x55   : > { %p755_p9 = scmp.lt.u32.totalorder %s1074_s7, %s1206_s4  ;;  %p756_p10 = scmp.lt.u32.totalorder %s754_s30, %s749_s12 }
  0x56   : > { %p752_p4 = pnand %p750_p2, %p992_p8  ;;  %p758_p1 = scmp.lt.u32.totalorder %s749_s12, %s1074_s7 }
  0x57   : > { %p757_p12 = por %p756_p10, %p755_p9 }
  0x58   : > { %p753_p7 = pneg %p752_p4 }
  0x59   : > { %p759_p3 = por %p758_p1, %p757_p12 }
  0x5b   : > { %p760_p11 = pnand %p759_p3, %p753_p7 }
  0x5d   : > { %763 = shalt.err (!%p760_p11)
}
  0x5e   : > { %s764_s28 = scalar_lea.vmem %s250_s6, 128  ;;  %s886_s9 = smov [#allocation8]  }
  0x5f   : > { %p765_p5 = scmp.ne.s32.totalorder %s250_s6, %s764_s28  ;;  %s769_s3 = sshll.u32 %s886_s9, 4  ;;  %s770_s3 = int_to_ptr.vmem [resolvable:$false] %s769_s3 }
  0x60   : > { %s771_s24 = scalar_lea.vmem %s770_s3, 256  ;;  %p772_p0 = scmp.lt.s32.totalorder %s250_s6, %s770_s3 }
  0x61   : > { %p767_p2 = pnand %p765_p5, %p992_p8  ;;  %p773_p6 = scmp.lt.s32.totalorder %s771_s24, %s764_s28 }
  0x63   : > { %p768_p4 = pneg %p767_p2  ;;  %p774_p13 = por %p773_p6, %p772_p0 }
  0x65   : > { %p775_p9 = pnand %p774_p13, %p768_p4 }
  0x67   : > { %778 = shalt.err (!%p775_p9)
}
  0x68   : > { %p1229_p10 = scmp.ne.s32.totalorder %s1219_s10, 0  ;;  %s779_s16 = scalar_lea.hbm %s1203_s1, 512 }
  0x69   : > { %p780_p8 = scmp.ne.s32.totalorder %s1203_s1, %s779_s16  ;;  %p1230_p3 = scmp.ne.s32.totalorder %s1228_s8, 0 }
  0x6a   : > { %640 = dma.hbm_to_vmem [thread:$0]  (!%p1229_p10), %s1074_s7, 128, %s250_s6, %s986_s14  }
  0x6b   : > { %p781_p5 = pneg %p1230_p3  ;;  %p786_p13 = scmp.lt.u32.totalorder %s779_s16, %s1203_s1 }
  0x6d   : > { %p782_p11 = pnand %p781_p5, %p780_p8 }
  0x6f   : > { %p783_p12 = pneg %p782_p11 }
  0x71   : > { %p788_p0 = pnand %p786_p13, %p783_p12 }
  0x73   : > { %791 = shalt.err (!%p788_p0)
}
  0x74   : > { %s792_s10 = scalar_lea.vmem %s1066_s27, 512  ;;  %p800_p2 = scmp.lt.s32.totalorder %s1066_s27, %s1066_s27 }
  0x75   : > { %p793_p6 = scmp.ne.s32.totalorder %s1066_s27, %s792_s10  ;;  %p801_p4 = scmp.lt.s32.totalorder %s792_s10, %s792_s10 }
  0x77   : > { %p795_p7 = pnand %p793_p6, %p781_p5  ;;  %p802_p9 = por %p801_p4, %p800_p2 }
  0x79   : > { %p796_p1 = pneg %p795_p7 }
  0x7b   : > { %p803_p10 = pnand %p802_p9, %p796_p1 }
  0x7d   : > { %806 = shalt.err (!%p803_p10)
}
  0x7e   : > { %s887_s14 = smov 128   ;;  %s888_s7 = smov 8  }
  0x7f   : > { %630 = dma.hbm_to_vmem [thread:$0]  (!%p1230_p3), %s1203_s1, 512, %s1066_s27, [#allocation6], %s887_s14, %s887_s14, %s888_s7  }
  0x80   : > { %p1231_p8 = scmp.ne.s32.totalorder %s1227_s23, 0 }
  0x81   : > { %s260_s9 = sand.u32 (!%p1231_p8), 1, %s1036_s11   ;;  %s262_s24 = sand.u32 (!%p1231_p8), 1, %s873_s19  }
  0x82   : > { %258 = sbr.rel (%p1231_p8) target bundleno = 558 (0x22e), region = 40  ;;  %s1128_s0 = sshll.u32 (!%p1231_p8), %s262_s24, 3 }
  0x83   : > { %s261_s12 = scalar_lea.sflag (!%p1231_p8), [#allocation3], %s260_s9  ;;  %s264_s16 = scalar_lea.vmem (!%p1231_p8), [#allocation2], %s1128_s0 }
  0x84   : > { %p1232_p5 = scmp.ne.s32.totalorder (!%p1231_p8), %s1223_s17, 0 }
  0x89   : > { %852 = dma.done.wait (%p1232_p5), %s261_s12, 128  }
  0x8a   : > { %854 = vsyncadd (%p1232_p5), %s261_s12, 4294967168  ;;  %p1233_p3 = scmp.eq.s32.totalorder %s1036_s11, 0 }
  0x8c   : > { %856 = dma.done.wait (%p1233_p3), [#allocation6], 512   ;;  %p1234_p11 = pmov %p1233_p3 }
  0x8d   : > { %s277_s23 = scalar_lea.vmem [#allocation7], %s1128_s0 }
  0x8e   : > { %858 = vsyncadd (%p1234_p11), [#allocation6], 4294966784 }
  0x8f   : > { %860 = dma.done.wait (%p1232_p5), %s261_s12, 256  }
  0x90   : > { %862 = vsyncadd (%p1232_p5), %s261_s12, 4294967040  ;;  %v889_v0 = vmov 0.0|0.0   ;;  %vm890_vm0 = vmmov 0   ;;  %v891_v1 = vmov 0.0   ;;  %v324_v2 = vld [vmem:[#allocation5] sm:$0xff]  ;;  %v325_v3 = vld [vmem:[#allocation5 + $0x8] sm:$0xff]  ;;  %v329_v9 = vlaneseq }
  0x91   : > { %609 = vmatprep.subr.bf16.mxu0 %v889_v0  ;;  %606 = vmatprep.mubr.msk.f32.mxu0 %vm890_vm0, %v891_v1  ;;  %v326_v4 = vld [vmem:[#allocation5 + $0x10] sm:$0xff]  ;;  %v610_v5 = vpack.c.bf16 %v325_v3, %v324_v2  ;;  %v327_v6 = vld [vmem:[#allocation5 + $0x18] sm:$0xff]  ;;  %vm333_vm1 = vcmask 261120   ;;  %v407_v15 = vld [vmem:[%s277_s23] sm:$0xff]  ;;  %s286_s8 = scalar_lea.vmem [#allocation8], %s1128_s0  ;;  %s590_s29 = sshll.u32 %s1036_s11, 7 }
  0x92   : > { %v613_v7 = vpack.c.bf16 %v327_v6, %v326_v4  ;;  %v323_v8 = vld [vmem:[%s264_s16] sm:$0xff]  ;;  %v330_v10 = vshrl.u32 %v329_v9, 7  ;;  %s322_s30 = scalar_lea.vmem [#allocation9], %s1128_s0  ;;  %s1156_s14 = scalar_lea.hbm %s1207_s5, %s590_s29 }
  0x93   : > { %611 = vmatpush3.bf16.msra.mxu0 %v610_v5  ;;  %v328_v12 = vld [vmem:[%s1204_s2] sm:$0x7]  ;;  %s452_s3 = sshll.u32 %s322_s30, 4  ;;  %s439_s7 = scalar_lea.sflag [#allocation4], %s262_s24  ;;  %s1158_s3 = int_to_ptr.vmem [resolvable:$true] %s452_s3 }
  0x94   : > { %612 = vmatprep.subr.bf16.mxu0 %v889_v0  ;;  %v331_v11 = vsub.s32 0, %v330_v10  ;;  %v409_v18 = vld [vmem:[%s286_s8] sm:$0xff]  ;;  %v428_v32 = vsub.s32 1, %v330_v10  ;;  %v434_v34 = vsub.s32 2, %v330_v10  ;;  %s807_s6 = scalar_lea.vmem %s1158_s3, 128  ;;  %p1235_p13 = scmp.ne.s32.totalorder %s1225_s13, 0 }
  0x95   : > { %p808_p12 = scmp.ne.s32.totalorder %s1158_s3, %s807_s6  ;;  %s892_s11 = smov [#allocation9]  }
  0x96   : > { %v332_v13 = vrot.slane %v328_v12, %v331_v11  ;;  %v429_v33 = vrot.slane %v328_v12, %v428_v32  ;;  %v435_v36 = vrot.slane %v328_v12, %v434_v34  ;;  %s811_s28 = sshll.u32 %s892_s11, 4  ;;  %s812_s28 = int_to_ptr.vmem [resolvable:$false] %s811_s28 }
  0x97   : > { %614 = vmatpush3.bf16.msra.mxu0 %v613_v7  ;;  %p809_p0 = pnand %p808_p12, %p1235_p13  ;;  %s813_s9 = scalar_lea.vmem %s812_s28, 256 }
  0x98   : > { %p814_p7 = scmp.lt.s32.totalorder %s1158_s3, %s812_s28  ;;  %p815_p1 = scmp.lt.s32.totalorder %s813_s9, %s807_s6 }
  0x99   : > { %p810_p6 = pneg %p809_p0 }
  0x9a   : > { %607 = vmatmul.mubr.msk.f32.vlgmr.msra.gmra.mrb[0].mxu0 %vm333_vm1, %v323_v8  ;;  %p816_p2 = por %p815_p1, %p814_p7 }
  0x9c   : > { %p817_p4 = pnand %p816_p2, %p810_p6 }
 0x16d   : > { %v403_v14 = vpop.f32.mrb[0].mxu0 }
 0x16e   : > { %v404_v16 = vadd.f32 %v403_v14, %v332_v13  ;;  %v608_v17 = vpop.f32.mrb[1].mxu0 }
 0x170   : > { %v408_v19 = vadd.f32 %v407_v15, %v404_v16 }
 0x172   : > { %v410_v20 = vadd.f32 %v409_v18, %v408_v19 }
 0x174   : > { %v411_v21 = vsel %vm333_vm1, %v410_v20, 0.0  ;;  %v414_v22 = vmul.f32 %v410_v20, %v410_v20 }
 0x175   : > { %412 = vadd.xlane.f32.xlu0 %v411_v21 }
 0x176   : > { %v415_v23 = vsel %vm333_vm1, %v414_v22, 0.0 }
 0x179   : > { %416 = vadd.xlane.f32.xlu0 %v415_v23 }
 0x202   : > { %v413_v24 = vpop.xlane.xlu0 %412 }
 0x203   : > { %v418_v25 = vmul.f32 0.03125, %v413_v24 }
 0x205   : > { %v420_v27 = vmul.f32 %v418_v25, %v418_v25  ;;  %v425_v37 = vsub.f32 %v410_v20, %v418_v25 }
 0x206   : > { %v417_v26 = vpop.xlane.xlu0 %416 }
 0x207   : > { %v419_v28 = vmul.f32 0.03125, %v417_v26 }
 0x209   : > { %v421_v29 = vsub.f32 %v419_v28, %v420_v27 }
 0x20b   : > { %v422_v30 = vmax.f32 %v421_v29, 0.0 }
 0x20d   : > { %v423_v31 = vadd.f32 1e-12, %v422_v30 }
 0x20f   : > { %687 = vrsqrt.f32 %v423_v31 }
 0x219   : > { %v688_v35 = vpop.eup %687 }
 0x21a   : > { %v430_v38 = vmul.f32 %v688_v35, %v429_v33 }
 0x21c   : > { %v431_v39 = vmul.f32 %v430_v38, %v425_v37 }
 0x21e   : > { %v436_v40 = vadd.f32 %v435_v36, %v431_v39 }
 0x220   : > { %437 = vst.msk [vmem:[%s322_s30] sm:$0xff] %vm333_vm1, %v436_v40 }
 0x221   : > { %820 = shalt.err (!%p817_p4)
}
 0x222   : > { %s821_s24 = scalar_lea.hbm %s1156_s14, 128  ;;  %s825_s16 = scalar_lea.hbm %s1207_s5, 256 }
 0x223   : > { %p822_p9 = scmp.ne.s32.totalorder %s1156_s14, %s821_s24  ;;  %p826_p5 = scmp.lt.u32.totalorder %s1156_s14, %s1207_s5 }
 0x224   : > { %p827_p3 = scmp.lt.u32.totalorder %s825_s16, %s821_s24  ;;  %p829_p12 = scmp.lt.u32.totalorder %s821_s24, %s1156_s14 }
 0x225   : > { %p823_p10 = pnand %p822_p9, %p1235_p13 }
 0x226   : > { %p828_p11 = por %p827_p3, %p826_p5 }
 0x227   : > { %p824_p8 = pneg %p823_p10 }
 0x228   : > { %p830_p0 = por %p829_p12, %p828_p11 }
 0x22a   : > { %p831_p6 = pnand %p830_p0, %p824_p8 }
 0x22c   : > { %834 = shalt.err (!%p831_p6)
}
 0x22d   : > { %625 = dma.vmem_to_hbm [thread:$0]  (%p1235_p13), %s1158_s3, 128, %s1156_s14, %s439_s7  }
 0x22e PF: > { %s464_s27 = sand.u32 1, %s869_s18   ;;  %p1236_p7 = scmp.ne.s32.totalorder %s1226_s15, 0 }
 0x22f   : > { %p1237_p1 = scmp.ge.s32.totalorder %s881_s21, 2  ;;  %s465_s8 = scalar_lea.sflag [#allocation4], %s464_s27 }
 0x231   : > { %p642_p2 = pnand %p1237_p1, %p1236_p7 }
 0x233   : > { %864 = dma.done.wait (!%p642_p2), %s465_s8, 128  }
 0x234   : > { %866 = vsyncadd (!%p642_p2), %s465_s8, 4294967168  ;;  %p19_p4 = scmp.ge.s32.totalorder %s944_s22, 4   ;;  %s1238_s18 = smov %s873_s19 }
 0x235   : > { %s1239_s19 = smov %s877_s20  ;;  %s1240_s20 = smov %s955_s25 }
 0x236   : > { %s1241_s21 = smov %s944_s22  ;;  %21 = sbr.rel (!%p19_p4) target bundleno = 9 (0x9), region = 111 }
 0x23d   :  { %470 = vsyncpa [#allocation3], 1 }
 0x23e   :  { %472 = vsyncpa [#allocation3 + $0x1], 1 }
 0x23f   :  { %473 = vsyncpa [#allocation6], 1 }
 0x240   :  { %474 = vsyncpa [#allocation4], 1 }
 0x241   :  { %476 = vsyncpa [#allocation4 + $0x1], 1 }

</bundles_post_ra>
